<compile_context>
chip_gen: v7x
topology: tpu7x:2x2x1
jax: 0.10.0
libtpu: 0.0.40
codegen_flags: <defaults>
</compile_context>

<pallas_src>
import jax
import jax.numpy as jnp
from jax.experimental import pallas as pl
from jax.experimental.pallas import tpu as pltpu


_MiB = 1024 * 1024
# Resident-weight size above which we drop to single buffering.
_SINGLE_BUFFER_WEIGHT_BYTES = 8 * _MiB


def _round_up(x: int, m: int) -> int:
    return (x + m - 1) // m * m


def _cdiv(a: int, b: int) -> int:
    return -(-a // b)


def _vmem_capacity_bytes() -> int:
    try:
        return int(pltpu.get_tpu_info().vmem_capacity_bytes)
    except Exception:
        return 64 * _MiB  # conservative fallback (v7x-sized)


def _pick_batch_tile(B: int, two_cores: bool) -> int:
    """Tile width along the lane-mapped batch axis (always a multiple of 128)."""
    if B <= 128:
        return 128
    target = 512  # measured tiling sweeps hit >=85% of HBM roofline at 512-1024
    n_steps = _cdiv(B, target)
    if two_cores:
        n_steps = max(2, 2 * _cdiv(n_steps, 2))  # even, >=2: keep both TCs busy
    return _round_up(_cdiv(B, n_steps), 128)


def mlp_kernel(xT_ref, w1_ref, b1_ref, w2_ref, b2_ref, o_ref):
    # fc1 on the MXU: W1 (H_pad, F_pad) @ x^T (F_pad, bt) -> h^T (H_pad, bt).
    # Plain K-contracted matmul (no in-kernel transpose); f32 accumulation.
    h = jnp.dot(w1_ref[...], xT_ref[...], preferred_element_type=jnp.float32)
    h = jnp.maximum(h + b1_ref[...], 0.0)          # bias lane-broadcast + ReLU

    # fc2: W2 (T, H_pad) @ h^T (H_pad, bt) -> (T, bt).  Batch stays on lanes,
    # so the output store is a full-width (lane-dense) vst.
    y = jnp.dot(w2_ref[...], h.astype(jnp.bfloat16),
                preferred_element_type=jnp.float32)
    o_ref[...] = (y + b2_ref[...]).astype(o_ref.dtype)


def prepare_mlp_params(w1, b1, w2, b2):
    """Pad/cast the Linear parameters ONCE (hoisted out of the per-call path).

    Native torch layout:
      w1: (H, F) = fc1.weight   b1: (H,) = fc1.bias
      w2: (T, H) = fc2.weight   b2: (T,) = fc2.bias
    """
    H, F = w1.shape
    T, H2 = w2.shape
    assert H2 == H and b1.shape == (H,) and b2.shape == (T,)
    F_pad = _round_up(F, 128)
    H_pad = _round_up(H, 128)
    w1p = jnp.zeros((H_pad, F_pad), jnp.bfloat16).at[:H, :F].set(w1.astype(jnp.bfloat16))
    b1p = jnp.zeros((H_pad, 1), jnp.float32).at[:H, 0].set(b1.astype(jnp.float32))
    w2p = jnp.zeros((T, H_pad), jnp.bfloat16).at[:, :H].set(w2.astype(jnp.bfloat16))
    b2p = b2.astype(jnp.float32).reshape(T, 1)
    return dict(w1=w1p, b1=b1p, w2=w2p, b2=b2p,
                F=F, H=H, T=T, F_pad=F_pad, H_pad=H_pad)


def mlp_forward(x, params, *, batch_tile=None):
    """relu(x @ W1^T + b1) @ W2^T + b2, flattened (matches the torch forward)."""
    B, F = x.shape
    assert F == params["F"], (F, params["F"])
    F_pad, H_pad, T = params["F_pad"], params["H_pad"], params["T"]

    vmem_cap = _vmem_capacity_bytes()
    budget = int(vmem_cap * 0.85)              # ~108 MiB v5e/v6e, ~54 MiB v7x
    two_cores = vmem_cap <= 80 * _MiB          # v7x-class: 64 MiB VMEM, 2 TCs/chip

    if batch_tile is None:
        batch_tile = _pick_batch_tile(B, two_cores)
    batch_tile = max(128, _round_up(batch_tile, 128))        # lane-dense stores
    batch_tile = min(batch_tile, _round_up(B, 128))

    # Resident weights (constant index_map): single-buffer once they are large.
    resident_bytes = (H_pad * F_pad * 2                # W1 bf16
                      + H_pad * 128 * 4                # b1 f32 (lane-padded)
                      + T * H_pad * 2                  # W2 bf16
                      + _round_up(T, 8) * 128 * 4)     # b2 f32 (tile-padded)
    single_buffer_weights = resident_bytes >= _SINGLE_BUFFER_WEIGHT_BYTES

    def _need(bt):
        w_bufs = 1 if single_buffer_weights else 2
        return (2 * F_pad * bt * 2          # x^T tile, bf16, double-buffered
                + 2 * T * bt * 4            # out tile, f32, double-buffered
                + w_bufs * resident_bytes   # resident W1 / b1 / W2 / b2
                + bt * H_pad * 4            # h^T f32 accumulator
                + bt * H_pad * 2            # bf16 copy of h^T fed to fc2
                + bt * H_pad * 4)           # headroom for one more f32 temp

    while _need(batch_tile) > budget and batch_tile > 128:
        batch_tile = max(128, (batch_tile // 2 // 128) * 128)

    need = _need(batch_tile)
    vmem_limit = min(max(need * 5 // 4, 32 * _MiB), budget)
    if need > budget:
        # TODO(synk): weights this large need a K-tiling grid axis; until then
        # request what we actually need (bounded by physical VMEM).
        vmem_limit = min(need * 5 // 4, vmem_cap)

    B_pad = _round_up(B, batch_tile)
    grid = (B_pad // batch_tile,)

    # x is the only per-call tensor touched here: one transpose+cast(+pad) pass
    # producing the lane-major layout the kernel consumes directly.
    if F == F_pad and B == B_pad:
        xT = x.T.astype(jnp.bfloat16)
    else:
        xT = jnp.zeros((F_pad, B_pad), jnp.bfloat16).at[:F, :B].set(
            x.T.astype(jnp.bfloat16))

    if single_buffer_weights:
        def _resident(shape):
            return pl.BlockSpec(shape, lambda i: (0, 0),
                                pipeline_mode=pl.Buffered(1))
    else:
        def _resident(shape):
            return pl.BlockSpec(shape, lambda i: (0, 0))

    out_tb = pl.pallas_call(
        mlp_kernel,
        out_shape=jax.ShapeDtypeStruct((T, B_pad), jnp.float32),
        grid_spec=pltpu.PrefetchScalarGridSpec(
            num_scalar_prefetch=0,
            grid=grid,
            in_specs=[
                pl.BlockSpec((F_pad, batch_tile), lambda i: (0, i)),  # x^T tile
                _resident((H_pad, F_pad)),                            # W1 (resident)
                _resident((H_pad, 1)),                                # b1 (resident)
                _resident((T, H_pad)),                                # W2 (resident)
                _resident((T, 1)),                                    # b2 (resident)
            ],
            out_specs=pl.BlockSpec((T, batch_tile), lambda i: (0, i)),
        ),
        compiler_params=pltpu.CompilerParams(
            dimension_semantics=("parallel",),
            vmem_limit_bytes=vmem_limit,
        ),
    )(xT, params["w1"], params["b1"], params["w2"], params["b2"])

    # (T, B) -> torch layout (B, T) row-major, then .flatten().
    return out_tb[:, :B].T.reshape(-1)


if __name__ == "__main__":
    key = jax.random.PRNGKey(0)

    def _run(B, F, H, T, kseed, batch_tile=None):
        kx, kw1, kb1, kw2, kb2 = jax.random.split(kseed, 5)
        x = jax.random.normal(kx, (B, F), dtype=jnp.float32)
        # Native torch nn.Linear layout: weight is (out_features, in_features).
        w1 = jax.random.normal(kw1, (H, F), dtype=jnp.float32) * 0.1
        b1 = jax.random.normal(kb1, (H,), dtype=jnp.float32) * 0.1
        w2 = jax.random.normal(kw2, (T, H), dtype=jnp.float32) * 0.1
        b2 = jax.random.normal(kb2, (T,), dtype=jnp.float32) * 0.1

        params = prepare_mlp_params(w1, b1, w2, b2)   # hoisted, done once
        out = jax.block_until_ready(mlp_forward(x, params, batch_tile=batch_tile))

        # Reference in plain f32 JAX (kernel uses bf16 MXU operands -> looser tol).
        ref = (jnp.maximum(x @ w1.T + b1, 0.0) @ w2.T + b2).reshape(-1)
        assert out.shape == (B * T,), (out.shape, B, T)
        assert jnp.allclose(out, ref, atol=5e-2, rtol=5e-2), (
            float(jnp.max(jnp.abs(out - ref))))

    k1, k2 = jax.random.split(key)
    # Small shapes implied by the module (T=1, single grid step).
    _run(B=8, F=32, H=32, T=1, kseed=k1)
    # Multi-step grid, unaligned F/H/B padding, and the T>1 bias path.
    _run(B=300, F=96, H=160, T=3, kseed=k2, batch_tile=128)

    print("KERNEL_OK")
</pallas_src>

<mosaic_0001>
module attributes {stable_mosaic.version = 11 : i64} {
  func.func @mlp_kernel(%arg0: i32, %arg1: memref<128x128xbf16, #tpu.memory_space<vmem>>, %arg2: memref<128x128xbf16, #tpu.memory_space<vmem>>, %arg3: memref<128x1xf32, #tpu.memory_space<vmem>>, %arg4: memref<1x128xbf16, #tpu.memory_space<vmem>>, %arg5: memref<1x1xf32, #tpu.memory_space<vmem>>, %arg6: memref<1x128xf32, #tpu.memory_space<vmem>>) attributes {dimension_semantics = [#tpu.dimension_semantics<parallel>], iteration_bounds = array<i64: 1>, scalar_prefetch = 0 : i64, scratch_operands = 0 : i64, tpu.core_type = #tpu.core_type<tc>, window_params = [{transform_indices = @transform_0, window_bounds = array<i64: 128, 128>}, {pipeline_mode = #tpu.pipeline_mode<synchronous>, transform_indices = @transform_1, window_bounds = array<i64: 128, 128>}, {pipeline_mode = #tpu.pipeline_mode<synchronous>, transform_indices = @transform_2, window_bounds = array<i64: 128, 1>}, {pipeline_mode = #tpu.pipeline_mode<synchronous>, transform_indices = @transform_3, window_bounds = array<i64: 1, 128>}, {pipeline_mode = #tpu.pipeline_mode<synchronous>, transform_indices = @transform_4, window_bounds = array<i64: 1, 1>}, {transform_indices = @transform_5, window_bounds = array<i64: 1, 128>}]} {
    %c0 = arith.constant 0 : index
    %c0_0 = arith.constant 0 : index
    %0 = vector.load %arg2[%c0, %c0_0] : memref<128x128xbf16, #tpu.memory_space<vmem>>, vector<128x128xbf16>
    %c0_1 = arith.constant 0 : index
    %c0_2 = arith.constant 0 : index
    %1 = vector.load %arg1[%c0_1, %c0_2] : memref<128x128xbf16, #tpu.memory_space<vmem>>, vector<128x128xbf16>
    %cst = arith.constant dense<0.000000e+00> : vector<128x128xf32>
    %2 = tpu.matmul %0, %1, %cst {dimension_numbers = #tpu.dot_dimension_numbers<[1], [0], [0], [1], [0, 0, 1, 1], [], []>} : vector<128x128xbf16>, vector<128x128xbf16>, vector<128x128xf32> -> vector<128x128xf32>
    %c0_3 = arith.constant 0 : index
    %c0_4 = arith.constant 0 : index
    %3 = vector.load %arg3[%c0_3, %c0_4] : memref<128x1xf32, #tpu.memory_space<vmem>>, vector<128x1xf32>
    %4 = vector.broadcast %3 : vector<128x1xf32> to vector<128x128xf32>
    %5 = arith.addf %2, %4 : vector<128x128xf32>
    %cst_5 = arith.constant 0.000000e+00 : f32
    %6 = vector.broadcast %cst_5 : f32 to vector<128x128xf32>
    %7 = arith.maximumf %5, %6 : vector<128x128xf32>
    %c0_6 = arith.constant 0 : index
    %c0_7 = arith.constant 0 : index
    %8 = vector.load %arg4[%c0_6, %c0_7] : memref<1x128xbf16, #tpu.memory_space<vmem>>, vector<1x128xbf16>
    %9 = arith.truncf %7 : vector<128x128xf32> to vector<128x128xbf16>
    %cst_8 = arith.constant dense<0.000000e+00> : vector<1x128xf32>
    %10 = tpu.matmul %8, %9, %cst_8 {dimension_numbers = #tpu.dot_dimension_numbers<[1], [0], [0], [1], [0, 0, 1, 1], [], []>} : vector<1x128xbf16>, vector<128x128xbf16>, vector<1x128xf32> -> vector<1x128xf32>
    %c0_9 = arith.constant 0 : index
    %c0_10 = arith.constant 0 : index
    %11 = vector.load %arg5[%c0_9, %c0_10] : memref<1x1xf32, #tpu.memory_space<vmem>>, vector<1x1xf32>
    %12 = vector.broadcast %11 : vector<1x1xf32> to vector<1x128xf32>
    %13 = arith.addf %10, %12 : vector<1x128xf32>
    %c0_11 = arith.constant 0 : index
    %c0_12 = arith.constant 0 : index
    %14 = vector.load %arg6[%c0_11, %c0_12] : memref<1x128xf32, #tpu.memory_space<vmem>>, vector<1x128xf32>
    tpu.vector_store %arg6[%c0_11, %c0_12], %13 {strides = array<i32>} : memref<1x128xf32, #tpu.memory_space<vmem>>, vector<1x128xf32>,
    return
  }
  func.func @transform_0(%arg0: i32) -> (i32, i32) {
    %c0_i32 = arith.constant 0 : i32
    %c0_i32_0 = arith.constant 0 : i32
    return %c0_i32, %arg0 : i32, i32
  }
  func.func @transform_1(%arg0: i32) -> (i32, i32) {
    %c0_i32 = arith.constant 0 : i32
    %c0_i32_0 = arith.constant 0 : i32
    %c0_i32_1 = arith.constant 0 : i32
    return %c0_i32, %c0_i32_0 : i32, i32
  }
  func.func @transform_2(%arg0: i32) -> (i32, i32) {
    %c0_i32 = arith.constant 0 : i32
    %c0_i32_0 = arith.constant 0 : i32
    %c0_i32_1 = arith.constant 0 : i32
    return %c0_i32, %c0_i32_0 : i32, i32
  }
  func.func @transform_3(%arg0: i32) -> (i32, i32) {
    %c0_i32 = arith.constant 0 : i32
    %c0_i32_0 = arith.constant 0 : i32
    %c0_i32_1 = arith.constant 0 : i32
    return %c0_i32, %c0_i32_0 : i32, i32
  }
  func.func @transform_4(%arg0: i32) -> (i32, i32) {
    %c0_i32 = arith.constant 0 : i32
    %c0_i32_0 = arith.constant 0 : i32
    %c0_i32_1 = arith.constant 0 : i32
    return %c0_i32, %c0_i32_0 : i32, i32
  }
  func.func @transform_5(%arg0: i32) -> (i32, i32) {
    %c0_i32 = arith.constant 0 : i32
    %c0_i32_0 = arith.constant 0 : i32
    return %c0_i32, %arg0 : i32, i32
  }
}

</mosaic_0001>

<bundles_post_ra>
// kernel: tpu_custom_call.1
= control target key start
LH: loop header
LB: loop body
LE: loop exit
PB: predicated region body
PF: predicated region fallthrough
CT: control target
= control target key end

     0   :  { %s731_s0 = inlined_call_operand.vmem [shape: bf16[128,128], index: 0, kind: input, shape index: {}]   ;;  %s732_s1 = inlined_call_operand.vmem [shape: bf16[128,128], index: 1, kind: input, shape index: {}]   ;;  %s733_s2 = inlined_call_operand.vmem [shape: f32[128,1], index: 2, kind: input, shape index: {}]   ;;  %s734_s3 = inlined_call_operand.vmem [shape: bf16[1,128], index: 3, kind: input, shape index: {}]   ;;  %s735_s4 = inlined_call_operand.<no memory space> [shape: f32[1,1], index: 4, kind: input, shape index: {}]   ;;  %s736_s5 = inlined_call_operand.hbm [shape: f32[1,128], index: 5, kind: output, shape index: {}]  }
   0x1   :  { %v10_v0 = vstv %s735_s4 }
   0x2   :  { %11 = vst [vmem:[#allocation2] sm:$0x1] %v10_v0 }
   0x3   :  { %v534_v1 = vld [vmem:[%s731_s0] sm:$0xff]   ;;  %v535_v2 = vld [vmem:[%s731_s0 + $0x8] sm:$0xff]   ;;  %v574_v3 = vmov 0   ;;  %v536_v4 = vld [vmem:[%s731_s0 + $0x10] sm:$0xff]  }
   0x4   :  { %532 = vset.pattern.permute.xlu0 %v574_v3  ;;  %533 = vset.pattern.permute.xlu1 %v574_v3  ;;  %v537_v5 = vld [vmem:[%s731_s0 + $0x18] sm:$0xff]   ;;  %v542_v6 = vld [vmem:[%s732_s1] sm:$0xff]   ;;  %v539_v8 = vld [vmem:[%s731_s0 + $0x28] sm:$0xff]  }
   0x5   :  { %476 = vmatprep.subr.bf16.mxu0 %v534_v1  ;;  %492 = vmatprep.mubr.bf16.mxu0 %v542_v6  ;;  %v538_v7 = vld [vmem:[%s731_s0 + $0x20] sm:$0xff]   ;;  %v58_v10 = vld [vmem:[%s733_s2 + $0x10] sm:$0xff]  ;;  %v57_v11 = vld [vmem:[%s733_s2 + $0x8] sm:$0xff] }
   0x6   :  { %477 = vmatpush3.bf16.msra.mxu0 %v534_v1  ;;  %v56_v9 = vld [vmem:[%s733_s2] sm:$0xff]  ;;  %84 = vperm.xlu1 %533, %v58_v10   ;;  %v59_v12 = vld [vmem:[%s733_s2 + $0x18] sm:$0xff]  ;;  %v540_v13 = vld [vmem:[%s731_s0 + $0x30] sm:$0xff]  }
   0x7   :  { %478 = vmatprep.subr.bf16.mxu0 %v535_v2  ;;  %74 = vperm.xlu0 %532, %v56_v9  }
   0xa   :  { %479 = vmatpush3.bf16.msra.mxu0 %v535_v2  ;;  %89 = vperm.xlu1 %533, %v59_v12  }
   0xb   :  { %480 = vmatprep.subr.bf16.mxu0 %v536_v4  ;;  %79 = vperm.xlu0 %532, %v57_v11  }
   0xe   :  { %481 = vmatpush3.bf16.msra.mxu0 %v536_v4 }
   0xf   :  { %482 = vmatprep.subr.bf16.mxu0 %v537_v5 }
  0x12   :  { %483 = vmatpush3.bf16.msra.mxu0 %v537_v5 }
  0x13   :  { %484 = vmatprep.subr.bf16.mxu0 %v538_v7 }
  0x16   :  { %485 = vmatpush3.bf16.msra.mxu0 %v538_v7 }
  0x17   :  { %486 = vmatprep.subr.bf16.mxu0 %v539_v8 }
  0x18   :  { %12 = vsyncpa [#allocation4], 0  ;;  %v60_v14 = vld [vmem:[%s733_s2 + $0x20] sm:$0xff]  ;;  %v61_v15 = vld [vmem:[%s733_s2 + $0x28] sm:$0xff]  ;;  %v575_v35 = vmov 0.0   ;;  %vm576_vm0 = vmmov 0  }
  0x19   :  { %v541_v16 = vld [vmem:[%s731_s0 + $0x38] sm:$0xff]   ;;  %94 = vperm.xlu0 %532, %v60_v14   ;;  %99 = vperm.xlu1 %533, %v61_v15   ;;  %v62_v17 = vld [vmem:[%s733_s2 + $0x30] sm:$0xff]  ;;  %v543_v19 = vld [vmem:[%s732_s1 + $0x8] sm:$0xff]   ;;  %s577_s0 = smov [#allocation3]  }
  0x1a   :  { %487 = vmatpush3.bf16.msra.mxu0 %v539_v8  ;;  %v63_v18 = vld [vmem:[%s733_s2 + $0x38] sm:$0xff]  ;;  %v64_v20 = vld [vmem:[%s733_s2 + $0x40] sm:$0xff]  ;;  %v65_v21 = vld [vmem:[%s733_s2 + $0x48] sm:$0xff]  ;;  %508 = vmatprep.subr.bf16.mxu1 %v575_v35  ;;  %s427_s30 = sshll.u32 %s577_s0, 4  ;;  %s428_s30 = int_to_ptr.vmem [resolvable:$true] %s427_s30 }
  0x1b   :  { %488 = vmatprep.subr.bf16.mxu0 %v540_v13  ;;  %v544_v22 = vld [vmem:[%s732_s1 + $0x10] sm:$0xff]   ;;  %v67_v24 = vld [vmem:[%s733_s2 + $0x58] sm:$0xff]  ;;  %v68_v26 = vld [vmem:[%s733_s2 + $0x60] sm:$0xff]  ;;  %524 = vmatprep.mubr.msk.bf16.mxu1 %vm576_vm0, %v575_v35  ;;  %s550_s6 = scalar_lea.vmem %s428_s30, 16  ;;  %s554_s7 = scalar_lea.vmem %s428_s30, 32 }
  0x1c   :  { %v66_v23 = vld [vmem:[%s733_s2 + $0x50] sm:$0xff]  ;;  %v545_v25 = vld [vmem:[%s732_s1 + $0x18] sm:$0xff]   ;;  %v69_v27 = vld [vmem:[%s733_s2 + $0x68] sm:$0xff]  ;;  %p551_p0 = scmp.ne.s32.totalorder %s428_s30, %s550_s6  ;;  %p555_p1 = scmp.lt.s32.totalorder %s428_s30, %s428_s30 }
  0x1d   :  { %104 = vperm.xlu0 %532, %v62_v17   ;;  %109 = vperm.xlu1 %533, %v63_v18   ;;  %v546_v28 = vld [vmem:[%s732_s1 + $0x20] sm:$0xff]   ;;  %v70_v29 = vld [vmem:[%s733_s2 + $0x70] sm:$0xff]  ;;  %v71_v30 = vld [vmem:[%s733_s2 + $0x78] sm:$0xff]  ;;  %p556_p2 = scmp.lt.s32.totalorder %s554_s7, %s550_s6 }
  0x1e   :  { %489 = vmatpush3.bf16.msra.mxu0 %v540_v13  ;;  %v547_v31 = vld [vmem:[%s732_s1 + $0x28] sm:$0xff]   ;;  %v370_v32 = vld [vmem:[#allocation2] sm:$0x1]  ;;  %v548_v33 = vld [vmem:[%s732_s1 + $0x30] sm:$0xff]  }
  0x1f   :  { %490 = vmatprep.subr.bf16.mxu0 %v541_v16  ;;  %v549_v34 = vld [vmem:[%s732_s1 + $0x38] sm:$0xff]   ;;  %p557_p3 = por %p556_p2, %p555_p1 }
  0x21   :  { %114 = vperm.xlu0 %532, %v64_v20   ;;  %119 = vperm.xlu1 %533, %v65_v21   ;;  %p558_p4 = pnand %p557_p3, %p551_p0 }
  0x22   :  { %491 = vmatpush3.bf16.msra.mxu0 %v541_v16 }
  0x25   :  { %493 = vmatmul.mubr.bf16.vlgmr.msra.gmra.mrb[0].mxu0 %v543_v19  ;;  %124 = vperm.xlu0 %532, %v66_v23  }
  0x26   :  { %496 = vmatprep.mubr.bf16.mxu0 %v544_v22  ;;  %129 = vperm.xlu1 %533, %v67_v24  }
  0x29   :  { %134 = vperm.xlu0 %532, %v68_v26  }
  0x2a   :  { %139 = vperm.xlu1 %533, %v69_v27  }
  0x2d   :  { %497 = vmatmul.mubr.bf16.gmra.mrb[4].mxu0 %v545_v25  ;;  %144 = vperm.xlu0 %532, %v70_v29  }
  0x2e   :  { %500 = vmatprep.mubr.bf16.mxu0 %v546_v28  ;;  %149 = vperm.xlu1 %533, %v71_v30  }
  0x31   :  { %373 = vperm.xlu0 %532, %v370_v32  }
  0x35   :  { %501 = vmatmul.mubr.bf16.gmra.mrb[8].mxu0 %v547_v31 }
  0x36   :  { %504 = vmatprep.mubr.bf16.mxu0 %v548_v33 }
  0x3d   :  { %505 = vmatmul.mubr.bf16.gmra.mrb[12].mxu0 %v549_v34 }
  0x85   :  { %v85_v37 = vpop.permute.xlu1 %84 }
  0x86   :  { %v75_v36 = vpop.permute.xlu0 %74 }
  0x89   :  { %v90_v39 = vpop.permute.xlu1 %89 }
  0x8a   :  { %v80_v38 = vpop.permute.xlu0 %79 }
  0x98   :  { %v95_v40 = vpop.permute.xlu0 %94  ;;  %v100_v41 = vpop.permute.xlu1 %99 }
  0x9c   :  { %v105_v42 = vpop.permute.xlu0 %104  ;;  %v110_v46 = vpop.permute.xlu1 %109 }
  0xa0   :  { %v115_v54 = vpop.permute.xlu0 %114  ;;  %v120_v58 = vpop.permute.xlu1 %119 }
  0xa4   :  { %v125_v3 = vpop.permute.xlu0 %124 }
  0xa5   :  { %v130_v7 = vpop.permute.xlu1 %129 }
  0xa8   :  { %v135_v15 = vpop.permute.xlu0 %134 }
  0xa9   :  { %v140_v20 = vpop.permute.xlu1 %139 }
  0xac   :  { %v145_v27 = vpop.permute.xlu0 %144 }
  0xad   :  { %v150_v32 = vpop.permute.xlu1 %149 }
  0xf8   :  { %v494_v43 = vpop.f32.mrb[0].mxu0 }
  0xf9   :  { %v291_v44 = vadd.f32 %v494_v43, %v85_v37  ;;  %v282_v45 = vpop.f32.mrb[1].mxu0 }
  0xfa   :  { %v283_v47 = vadd.f32 %v282_v45, %v75_v36  ;;  %v495_v48 = vpop.f32.mrb[2].mxu0  ;;  %v361_v45 = vld [vmem:[%s734_s3] sm:$0x1] }
  0xfb   :  { %v294_v49 = vadd.f32 %v495_v48, %v90_v39  ;;  %v285_v50 = vpop.f32.mrb[3].mxu0  ;;  %v347_v52 = vmax.f32 %v291_v44, 0.0 }
  0xfc   :  { %v286_v51 = vadd.f32 %v285_v50, %v80_v38  ;;  %v345_v55 = vmax.f32 %v283_v47, 0.0 }
  0xfd   :  { %v348_v53 = vmax.f32 %v294_v49, 0.0  ;;  %v374_v49 = vpop.permute.xlu0 %373 }
  0xfe   :  { %v346_v56 = vmax.f32 %v286_v51, 0.0 }
  0xff   :  { %v363_v57 = vpack.c.bf16 %v348_v53, %v347_v52 }
 0x100   :  { %v498_v59 = vpop.f32.mrb[4].mxu0  ;;  %v362_v60 = vpack.c.bf16 %v346_v56, %v345_v55 }
 0x101   :  { %v307_v61 = vadd.f32 %v498_v59, %v105_v42  ;;  %v298_v62 = vpop.f32.mrb[5].mxu0 }
 0x102   :  { %v299_v63 = vadd.f32 %v298_v62, %v95_v40  ;;  %v499_v0 = vpop.f32.mrb[6].mxu0  ;;  %509 = vmatpush3.bf16.msra.mxu1 %v362_v60 }
 0x103   :  { %v310_v1 = vadd.f32 %v499_v0, %v110_v46  ;;  %v301_v2 = vpop.f32.mrb[7].mxu0  ;;  %510 = vmatprep.subr.bf16.mxu1 %v575_v35  ;;  %v351_v5 = vmax.f32 %v307_v61, 0.0  ;;  %v376_v46 = vlaneseq }
 0x104   :  { %v302_v4 = vadd.f32 %v301_v2, %v100_v41  ;;  %v349_v8 = vmax.f32 %v299_v63, 0.0 }
 0x105   :  { %v352_v6 = vmax.f32 %v310_v1, 0.0  ;;  %v377_v47 = vshrl.u32 %v376_v46, 7 }
 0x106   :  { %v350_v9 = vmax.f32 %v302_v4, 0.0  ;;  %511 = vmatpush3.bf16.msra.mxu1 %v363_v57 }
 0x107   :  { %v365_v10 = vpack.c.bf16 %v352_v6, %v351_v5  ;;  %512 = vmatprep.subr.bf16.mxu1 %v575_v35  ;;  %v378_v48 = vsub.s32 0, %v377_v47 }
 0x108   :  { %v364_v11 = vpack.c.bf16 %v350_v9, %v349_v8  ;;  %v502_v12 = vpop.f32.mrb[8].mxu0 }
 0x109   :  { %v323_v13 = vadd.f32 %v502_v12, %v125_v3  ;;  %v314_v14 = vpop.f32.mrb[9].mxu0  ;;  %v379_v50 = vrot.slane %v374_v49, %v378_v48 }
 0x10a   :  { %v315_v16 = vadd.f32 %v314_v14, %v115_v54  ;;  %v503_v17 = vpop.f32.mrb[10].mxu0  ;;  %513 = vmatpush3.bf16.msra.mxu1 %v364_v11 }
 0x10b   :  { %v326_v18 = vadd.f32 %v503_v17, %v130_v7  ;;  %v317_v19 = vpop.f32.mrb[11].mxu0  ;;  %514 = vmatprep.subr.bf16.mxu1 %v575_v35  ;;  %v355_v22 = vmax.f32 %v323_v13, 0.0 }
 0x10c   :  { %v318_v21 = vadd.f32 %v317_v19, %v120_v58  ;;  %v353_v24 = vmax.f32 %v315_v16, 0.0 }
 0x10d   :  { %v356_v23 = vmax.f32 %v326_v18, 0.0 }
 0x10e   :  { %v354_v25 = vmax.f32 %v318_v21, 0.0  ;;  %515 = vmatpush3.bf16.msra.mxu1 %v365_v10 }
 0x10f   :  { %v367_v26 = vpack.c.bf16 %v356_v23, %v355_v22  ;;  %516 = vmatprep.subr.bf16.mxu1 %v575_v35 }
 0x110   :  { %v366_v28 = vpack.c.bf16 %v354_v25, %v353_v24  ;;  %v506_v29 = vpop.f32.mrb[12].mxu0 }
 0x111   :  { %v339_v30 = vadd.f32 %v506_v29, %v145_v27  ;;  %v330_v31 = vpop.f32.mrb[13].mxu0 }
 0x112   :  { %v331_v33 = vadd.f32 %v330_v31, %v135_v15  ;;  %v507_v34 = vpop.f32.mrb[14].mxu0  ;;  %517 = vmatpush3.bf16.msra.mxu1 %v366_v28 }
 0x113   :  { %v342_v36 = vadd.f32 %v507_v34, %v150_v32  ;;  %v333_v37 = vpop.f32.mrb[15].mxu0  ;;  %518 = vmatprep.subr.bf16.mxu1 %v575_v35  ;;  %v359_v39 = vmax.f32 %v339_v30, 0.0 }
 0x114   :  { %v334_v38 = vadd.f32 %v333_v37, %v140_v20  ;;  %v357_v41 = vmax.f32 %v331_v33, 0.0 }
 0x115   :  { %v360_v40 = vmax.f32 %v342_v36, 0.0 }
 0x116   :  { %v358_v42 = vmax.f32 %v334_v38, 0.0  ;;  %519 = vmatpush3.bf16.msra.mxu1 %v367_v26 }
 0x117   :  { %v369_v43 = vpack.c.bf16 %v360_v40, %v359_v39  ;;  %520 = vmatprep.subr.bf16.mxu1 %v575_v35 }
 0x118   :  { %v368_v44 = vpack.c.bf16 %v358_v42, %v357_v41 }
 0x11a   :  { %521 = vmatpush3.bf16.msra.mxu1 %v368_v44 }
 0x11b   :  { %522 = vmatprep.subr.bf16.mxu1 %v575_v35 }
 0x11e   :  { %523 = vmatpush3.bf16.msra.mxu1 %v369_v43 }
 0x121   :  { %525 = vmatmul.mubr.bf16.vlgmr.msra.gmra.mrb[0].mxu1 %v361_v45 }
 0x1f4   :  { %v414_v51 = vpop.f32.mrb[0].mxu1 }
 0x1f5   :  { %v415_v52 = vadd.f32 %v414_v51, %v379_v50  ;;  %v526_v53 = vpop.f32.mrb[1].mxu1 }
 0x1f6   :  { %v417_v54 = vpop.f32.mrb[2].mxu1 }
 0x1f7   :  { %420 = vst [vmem:[#allocation3] sm:$0x1] %v415_v52  ;;  %v527_v35 = vpop.f32.mrb[3].mxu1 }
 0x1f8   :  { %561 = shalt.err (!%p558_p4)
}
 0x1f9   :  { %s562_s9 = scalar_lea.hbm %s736_s5, 16 }
 0x1fa   :  { %p563_p5 = scmp.ne.s32.totalorder %s736_s5, %s562_s9  ;;  %p566_p6 = scmp.lt.u32.totalorder %s562_s9, %s736_s5 }
 0x1fc   :  { %p568_p7 = pnand %p566_p6, %p563_p5 }
 0x1fe   :  { %571 = shalt.err (!%p568_p7)
}
 0x1ff   :  { %430 = dma.vmem_to_hbm [thread:$0]  %s428_s30, 16, %s736_s5, [#allocation4]  }
 0x200   :  { %572 = dma.done.wait [#allocation4], 16  }
 0x201   :  { %573 = vsyncadd [#allocation4], 4294967280 }
 0x202   :  { %434 = vsyncpa [#allocation4], 1 }

</bundles_post_ra>
